<compile_context>
chip_gen: v7x
topology: tpu7x:2x2x1
jax: 0.10.0
libtpu: 0.0.40
codegen_flags: <defaults>
</compile_context>

<pallas_src>
import functools

import jax
import jax.numpy as jnp
from jax.experimental import pallas as pl
from jax.experimental.pallas import tpu as pltpu


def _pick_tile(n, candidates):
    """Largest candidate that evenly divides n, else n itself (full extent)."""
    for c in candidates:
        if c <= n and n % c == 0:
            return c
    return n


def _attn_kernel(x_ref, w1_ref, b1_ref, w2_ref, b2_ref, w3_ref, b3_ref,
                 attn_ref, acc_ref, *, cin, inv_hw):
    h = pl.program_id(1)                      # spatial (reduction) axis, last

    @pl.when(h == 0)
    def _():
        acc_ref[...] = jnp.zeros_like(acc_ref)

    # Per-channel partial sum over this spatial tile (lane reduction).
    acc_ref[...] += jnp.sum(x_ref[...].astype(jnp.float32), axis=2, keepdims=True)

    @pl.when(h == pl.num_programs(1) - 1)
    def _():
        pooled = acc_ref[...] * inv_hw        # (bt, C, 1)  global average pool

        def dense(w_ref, b_ref, v):
            # 1x1 conv == channel mix.  v: (bt, Cin, 1); w_ref: (Cin, Cout, 1)
            # (pre-transposed so Cout sits on sublanes); b_ref: (1, Cout, 1).
            # Small C -> VPU broadcast MACs, skip the MXU entirely.
            # TODO(synk): for large C switch this channel mix to an MXU matmul.
            acc = b_ref[...]
            for i in range(cin):
                acc = acc + v[:, i:i + 1, :] * w_ref[i:i + 1, :, :]
            return acc                        # (bt, Cout, 1)

        identity = pooled
        t = jnp.maximum(dense(w1_ref, b1_ref, pooled), 0.0) + identity
        t = jnp.maximum(dense(w2_ref, b2_ref, t), 0.0) + identity
        t = jnp.maximum(dense(w3_ref, b3_ref, t), 0.0)
        attn_ref[...] = 1.0 / (1.0 + jnp.exp(-t))   # sigmoid gate (bt, C, 1)


def _gate_kernel(x_ref, attn_ref, o_ref):
    # (bt, C, st) * (bt, C, 1): native lane broadcast of the per-channel gate.
    o_ref[...] = (x_ref[...] * attn_ref[...]).astype(o_ref.dtype)


def conv_channel_attention(x, w1, b1, w2, b2, w3, b3):
    """x: (N, C, H, W); w*: (C_out, C_in) squeezed 1x1 conv weights; b*: (C,)."""
    N, C, H, W = x.shape
    HW = H * W
    xr = x.reshape(N, C, HW)                  # free reshape, no transpose/pad

    bt = _pick_tile(N, (8, 4, 2, 1))                          # batch tile
    st = _pick_tile(HW, (4096, 2048, 1024, 512, 256, 128))    # spatial tile

    # Tiny parameter reshapes: weights -> (C_in, C_out, 1), biases -> (1, C, 1).
    w1t, w2t, w3t = (jnp.transpose(w)[:, :, None] for w in (w1, w2, w3))
    b1t, b2t, b3t = (b[None, :, None] for b in (b1, b2, b3))

    w_spec = pl.BlockSpec((C, C, 1), lambda n, h: (0, 0, 0))
    b_spec = pl.BlockSpec((1, C, 1), lambda n, h: (0, 0, 0))
    x_spec = pl.BlockSpec((bt, C, st), lambda n, h: (n, 0, h))
    a_spec = pl.BlockSpec((bt, C, 1), lambda n, h: (n, 0, 0))

    grid = (N // bt, HW // st)

    # Pass 1: pool + TripleConv (BN dead: spatial is 1x1) + sigmoid -> (N, C, 1)
    attn = pl.pallas_call(
        functools.partial(_attn_kernel, cin=C, inv_hw=1.0 / HW),
        out_shape=jax.ShapeDtypeStruct((N, C, 1), jnp.float32),
        grid_spec=pltpu.PrefetchScalarGridSpec(
            num_scalar_prefetch=0,
            grid=grid,
            in_specs=[x_spec, w_spec, b_spec, w_spec, b_spec, w_spec, b_spec],
            out_specs=a_spec,
            scratch_shapes=[pltpu.VMEM((bt, C, 1), jnp.float32)],
        ),
        compiler_params=pltpu.CompilerParams(
            dimension_semantics=("parallel", "arbitrary")),
    )(xr, w1t, b1t, w2t, b2t, w3t, b3t)

    # Pass 2: gate x by the per-channel attention (spatially tiled, mem-bound).
    out = pl.pallas_call(
        _gate_kernel,
        out_shape=jax.ShapeDtypeStruct((N, C, HW), x.dtype),
        grid_spec=pltpu.PrefetchScalarGridSpec(
            num_scalar_prefetch=0,
            grid=grid,
            in_specs=[x_spec, a_spec],
            out_specs=x_spec,
        ),
        compiler_params=pltpu.CompilerParams(
            dimension_semantics=("parallel", "parallel")),
    )(xr, attn)

    return out.reshape(N, C, H, W)


def reference(x, w1, b1, w2, b2, w3, b3):
    """Pure-JAX reference of the PyTorch forward (BN dead because spatial==1x1)."""
    pooled = jnp.mean(x, axis=(2, 3))  # (N, C)

    def dense(w, b, v):
        return v @ w.T + b

    identity = pooled
    h = jnp.maximum(dense(w1, b1, pooled), 0.0) + identity
    h = jnp.maximum(dense(w2, b2, h), 0.0) + identity
    h = jnp.maximum(dense(w3, b3, h), 0.0)
    attn = jax.nn.sigmoid(h)[:, :, None, None]
    return attn * x


if __name__ == "__main__":
    N, C, H, W = 2, 4, 16, 16
    key = jax.random.PRNGKey(0)
    ks = jax.random.split(key, 7)

    x = jax.random.normal(ks[0], (N, C, H, W), jnp.float32)

    # Deterministic parameter init (Conv2d 1x1 -> (C_out, C_in) weight + (C,) bias)
    bound = float(1.0 / jnp.sqrt(C))
    w1 = jax.random.uniform(ks[1], (C, C), jnp.float32, -bound, bound)
    b1 = jax.random.uniform(ks[2], (C,), jnp.float32, -bound, bound)
    w2 = jax.random.uniform(ks[3], (C, C), jnp.float32, -bound, bound)
    b2 = jax.random.uniform(ks[4], (C,), jnp.float32, -bound, bound)
    w3 = jax.random.uniform(ks[5], (C, C), jnp.float32, -bound, bound)
    b3 = jax.random.uniform(ks[6], (C,), jnp.float32, -bound, bound)

    out = conv_channel_attention(x, w1, b1, w2, b2, w3, b3)
    out = jax.block_until_ready(out)

    ref = reference(x, w1, b1, w2, b2, w3, b3)
    assert out.shape == x.shape and out.dtype == x.dtype
    assert jnp.allclose(out, ref, atol=1e-5, rtol=1e-5), "mismatch vs reference"

    print("KERNEL_OK")
</pallas_src>

<mosaic_0001>
module attributes {stable_mosaic.version = 11 : i64} {
  func.func @_attn_kernel(%arg0: i32, %arg1: i32, %arg2: memref<2x4x256xf32, #tpu.memory_space<vmem>>, %arg3: memref<4x4x1xf32, #tpu.memory_space<vmem>>, %arg4: memref<1x4x1xf32, #tpu.memory_space<vmem>>, %arg5: memref<4x4x1xf32, #tpu.memory_space<vmem>>, %arg6: memref<1x4x1xf32, #tpu.memory_space<vmem>>, %arg7: memref<4x4x1xf32, #tpu.memory_space<vmem>>, %arg8: memref<1x4x1xf32, #tpu.memory_space<vmem>>, %arg9: memref<2x4x1xf32, #tpu.memory_space<vmem>>, %arg10: memref<2x4x1xf32, #tpu.memory_space<vmem>>) attributes {dimension_semantics = [#tpu.dimension_semantics<parallel>, #tpu.dimension_semantics<arbitrary>], iteration_bounds = array<i64: 1, 1>, scalar_prefetch = 0 : i64, scratch_operands = 1 : i64, tpu.core_type = #tpu.core_type<tc>, window_params = [{transform_indices = @transform_0, window_bounds = array<i64: 2, 4, 256>}, {pipeline_mode = #tpu.pipeline_mode<synchronous>, transform_indices = @transform_1, window_bounds = array<i64: 4, 4, 1>}, {pipeline_mode = #tpu.pipeline_mode<synchronous>, transform_indices = @transform_2, window_bounds = array<i64: 1, 4, 1>}, {pipeline_mode = #tpu.pipeline_mode<synchronous>, transform_indices = @transform_3, window_bounds = array<i64: 4, 4, 1>}, {pipeline_mode = #tpu.pipeline_mode<synchronous>, transform_indices = @transform_4, window_bounds = array<i64: 1, 4, 1>}, {pipeline_mode = #tpu.pipeline_mode<synchronous>, transform_indices = @transform_5, window_bounds = array<i64: 4, 4, 1>}, {pipeline_mode = #tpu.pipeline_mode<synchronous>, transform_indices = @transform_6, window_bounds = array<i64: 1, 4, 1>}, {transform_indices = @transform_7, window_bounds = array<i64: 2, 4, 1>}]} {
    %c0_i32 = arith.constant 0 : i32
    %0 = arith.cmpi eq, %arg1, %c0_i32 : i32
    %1 = arith.extui %0 : i1 to i32
    %c0_i32_0 = arith.constant 0 : i32
    %2 = arith.cmpi ne, %1, %c0_i32_0 : i32
    scf.if %2 {
      %cst_11 = arith.constant 0.000000e+00 : f32
      %12 = vector.broadcast %cst_11 : f32 to vector<2x4x1xf32>
      %c0_12 = arith.constant 0 : index
      %c0_13 = arith.constant 0 : index
      %c0_14 = arith.constant 0 : index
      %13 = vector.load %arg10[%c0_12, %c0_13, %c0_14] : memref<2x4x1xf32, #tpu.memory_space<vmem>>, vector<2x4x1xf32>
      tpu.vector_store %arg10[%c0_12, %c0_13, %c0_14], %12 {strides = array<i32>} : memref<2x4x1xf32, #tpu.memory_space<vmem>>, vector<2x4x1xf32>,
    } else {
    }
    %c0 = arith.constant 0 : index
    %c0_1 = arith.constant 0 : index
    %c0_2 = arith.constant 0 : index
    %3 = vector.load %arg10[%c0, %c0_1, %c0_2] : memref<2x4x1xf32, #tpu.memory_space<vmem>>, vector<2x4x1xf32>
    %c0_3 = arith.constant 0 : index
    %c0_4 = arith.constant 0 : index
    %c0_5 = arith.constant 0 : index
    %4 = vector.load %arg2[%c0_3, %c0_4, %c0_5] : memref<2x4x256xf32, #tpu.memory_space<vmem>>, vector<2x4x256xf32>
    %cst = arith.constant dense<0.000000e+00> : vector<2x4xf32>
    %5 = vector.multi_reduction <add>, %4, %cst [2] : vector<2x4x256xf32> to vector<2x4xf32>
    %6 = vector.shape_cast %5 : vector<2x4xf32> to vector<2x4x1xf32>
    %7 = arith.addf %3, %6 : vector<2x4x1xf32>
    %c0_6 = arith.constant 0 : index
    %c0_7 = arith.constant 0 : index
    %c0_8 = arith.constant 0 : index
    %8 = vector.load %arg10[%c0_6, %c0_7, %c0_8] : memref<2x4x1xf32, #tpu.memory_space<vmem>>, vector<2x4x1xf32>
    tpu.vector_store %arg10[%c0_6, %c0_7, %c0_8], %7 {strides = array<i32>} : memref<2x4x1xf32, #tpu.memory_space<vmem>>, vector<2x4x1xf32>,
    %c0_i32_9 = arith.constant 0 : i32
    %9 = arith.cmpi eq, %arg1, %c0_i32_9 : i32
    %10 = arith.extui %9 : i1 to i32
    %c0_i32_10 = arith.constant 0 : i32
    %11 = arith.cmpi ne, %10, %c0_i32_10 : i32
    scf.if %11 {
      %c0_11 = arith.constant 0 : index
      %c0_12 = arith.constant 0 : index
      %c0_13 = arith.constant 0 : index
      %12 = vector.load %arg10[%c0_11, %c0_12, %c0_13] : memref<2x4x1xf32, #tpu.memory_space<vmem>>, vector<2x4x1xf32>
      %cst_14 = arith.constant 3.906250e-03 : f32
      %13 = vector.broadcast %cst_14 : f32 to vector<2x4x1xf32>
      %14 = arith.mulf %12, %13 : vector<2x4x1xf32>
      %c0_15 = arith.constant 0 : index
      %c0_16 = arith.constant 0 : index
      %c0_17 = arith.constant 0 : index
      %15 = vector.load %arg4[%c0_15, %c0_16, %c0_17] : memref<1x4x1xf32, #tpu.memory_space<vmem>>, vector<1x4x1xf32>
      %16 = vector.extract_strided_slice %14 {offsets = [0, 0, 0], sizes = [2, 1, 1], strides = [1, 1, 1]} : vector<2x4x1xf32> to vector<2x1x1xf32>
      %c0_18 = arith.constant 0 : index
      %c0_19 = arith.constant 0 : index
      %c0_20 = arith.constant 0 : index
      %17 = vector.load %arg3[%c0_18, %c0_19, %c0_20] : memref<4x4x1xf32, #tpu.memory_space<vmem>>, vector<1x4x1xf32>
      %18 = vector.broadcast %16 : vector<2x1x1xf32> to vector<2x4x1xf32>
      %19 = vector.broadcast %17 : vector<1x4x1xf32> to vector<2x4x1xf32>
      %20 = arith.mulf %18, %19 : vector<2x4x1xf32>
      %21 = vector.broadcast %15 : vector<1x4x1xf32> to vector<2x4x1xf32>
      %22 = arith.addf %21, %20 : vector<2x4x1xf32>
      %23 = vector.extract_strided_slice %14 {offsets = [0, 1, 0], sizes = [2, 1, 1], strides = [1, 1, 1]} : vector<2x4x1xf32> to vector<2x1x1xf32>
      %c1 = arith.constant 1 : index
      %c0_21 = arith.constant 0 : index
      %c0_22 = arith.constant 0 : index
      %24 = vector.load %arg3[%c1, %c0_21, %c0_22] : memref<4x4x1xf32, #tpu.memory_space<vmem>>, vector<1x4x1xf32>
      %25 = vector.broadcast %23 : vector<2x1x1xf32> to vector<2x4x1xf32>
      %26 = vector.broadcast %24 : vector<1x4x1xf32> to vector<2x4x1xf32>
      %27 = arith.mulf %25, %26 : vector<2x4x1xf32>
      %28 = arith.addf %22, %27 : vector<2x4x1xf32>
      %29 = vector.extract_strided_slice %14 {offsets = [0, 2, 0], sizes = [2, 1, 1], strides = [1, 1, 1]} : vector<2x4x1xf32> to vector<2x1x1xf32>
      %c2 = arith.constant 2 : index
      %c0_23 = arith.constant 0 : index
      %c0_24 = arith.constant 0 : index
      %30 = vector.load %arg3[%c2, %c0_23, %c0_24] : memref<4x4x1xf32, #tpu.memory_space<vmem>>, vector<1x4x1xf32>
      %31 = vector.broadcast %29 : vector<2x1x1xf32> to vector<2x4x1xf32>
      %32 = vector.broadcast %30 : vector<1x4x1xf32> to vector<2x4x1xf32>
      %33 = arith.mulf %31, %32 : vector<2x4x1xf32>
      %34 = arith.addf %28, %33 : vector<2x4x1xf32>
      %35 = vector.extract_strided_slice %14 {offsets = [0, 3, 0], sizes = [2, 1, 1], strides = [1, 1, 1]} : vector<2x4x1xf32> to vector<2x1x1xf32>
      %c3 = arith.constant 3 : index
      %c0_25 = arith.constant 0 : index
      %c0_26 = arith.constant 0 : index
      %36 = vector.load %arg3[%c3, %c0_25, %c0_26] : memref<4x4x1xf32, #tpu.memory_space<vmem>>, vector<1x4x1xf32>
      %37 = vector.broadcast %35 : vector<2x1x1xf32> to vector<2x4x1xf32>
      %38 = vector.broadcast %36 : vector<1x4x1xf32> to vector<2x4x1xf32>
      %39 = arith.mulf %37, %38 : vector<2x4x1xf32>
      %40 = arith.addf %34, %39 : vector<2x4x1xf32>
      %cst_27 = arith.constant 0.000000e+00 : f32
      %41 = vector.broadcast %cst_27 : f32 to vector<2x4x1xf32>
      %42 = arith.maximumf %40, %41 : vector<2x4x1xf32>
      %43 = arith.addf %42, %14 : vector<2x4x1xf32>
      %c0_28 = arith.constant 0 : index
      %c0_29 = arith.constant 0 : index
      %c0_30 = arith.constant 0 : index
      %44 = vector.load %arg6[%c0_28, %c0_29, %c0_30] : memref<1x4x1xf32, #tpu.memory_space<vmem>>, vector<1x4x1xf32>
      %45 = vector.extract_strided_slice %43 {offsets = [0, 0, 0], sizes = [2, 1, 1], strides = [1, 1, 1]} : vector<2x4x1xf32> to vector<2x1x1xf32>
      %c0_31 = arith.constant 0 : index
      %c0_32 = arith.constant 0 : index
      %c0_33 = arith.constant 0 : index
      %46 = vector.load %arg5[%c0_31, %c0_32, %c0_33] : memref<4x4x1xf32, #tpu.memory_space<vmem>>, vector<1x4x1xf32>
      %47 = vector.broadcast %45 : vector<2x1x1xf32> to vector<2x4x1xf32>
      %48 = vector.broadcast %46 : vector<1x4x1xf32> to vector<2x4x1xf32>
      %49 = arith.mulf %47, %48 : vector<2x4x1xf32>
      %50 = vector.broadcast %44 : vector<1x4x1xf32> to vector<2x4x1xf32>
      %51 = arith.addf %50, %49 : vector<2x4x1xf32>
      %52 = vector.extract_strided_slice %43 {offsets = [0, 1, 0], sizes = [2, 1, 1], strides = [1, 1, 1]} : vector<2x4x1xf32> to vector<2x1x1xf32>
      %c1_34 = arith.constant 1 : index
      %c0_35 = arith.constant 0 : index
      %c0_36 = arith.constant 0 : index
      %53 = vector.load %arg5[%c1_34, %c0_35, %c0_36] : memref<4x4x1xf32, #tpu.memory_space<vmem>>, vector<1x4x1xf32>
      %54 = vector.broadcast %52 : vector<2x1x1xf32> to vector<2x4x1xf32>
      %55 = vector.broadcast %53 : vector<1x4x1xf32> to vector<2x4x1xf32>
      %56 = arith.mulf %54, %55 : vector<2x4x1xf32>
      %57 = arith.addf %51, %56 : vector<2x4x1xf32>
      %58 = vector.extract_strided_slice %43 {offsets = [0, 2, 0], sizes = [2, 1, 1], strides = [1, 1, 1]} : vector<2x4x1xf32> to vector<2x1x1xf32>
      %c2_37 = arith.constant 2 : index
      %c0_38 = arith.constant 0 : index
      %c0_39 = arith.constant 0 : index
      %59 = vector.load %arg5[%c2_37, %c0_38, %c0_39] : memref<4x4x1xf32, #tpu.memory_space<vmem>>, vector<1x4x1xf32>
      %60 = vector.broadcast %58 : vector<2x1x1xf32> to vector<2x4x1xf32>
      %61 = vector.broadcast %59 : vector<1x4x1xf32> to vector<2x4x1xf32>
      %62 = arith.mulf %60, %61 : vector<2x4x1xf32>
      %63 = arith.addf %57, %62 : vector<2x4x1xf32>
      %64 = vector.extract_strided_slice %43 {offsets = [0, 3, 0], sizes = [2, 1, 1], strides = [1, 1, 1]} : vector<2x4x1xf32> to vector<2x1x1xf32>
      %c3_40 = arith.constant 3 : index
      %c0_41 = arith.constant 0 : index
      %c0_42 = arith.constant 0 : index
      %65 = vector.load %arg5[%c3_40, %c0_41, %c0_42] : memref<4x4x1xf32, #tpu.memory_space<vmem>>, vector<1x4x1xf32>
      %66 = vector.broadcast %64 : vector<2x1x1xf32> to vector<2x4x1xf32>
      %67 = vector.broadcast %65 : vector<1x4x1xf32> to vector<2x4x1xf32>
      %68 = arith.mulf %66, %67 : vector<2x4x1xf32>
      %69 = arith.addf %63, %68 : vector<2x4x1xf32>
      %cst_43 = arith.constant 0.000000e+00 : f32
      %70 = vector.broadcast %cst_43 : f32 to vector<2x4x1xf32>
      %71 = arith.maximumf %69, %70 : vector<2x4x1xf32>
      %72 = arith.addf %71, %14 : vector<2x4x1xf32>
      %c0_44 = arith.constant 0 : index
      %c0_45 = arith.constant 0 : index
      %c0_46 = arith.constant 0 : index
      %73 = vector.load %arg8[%c0_44, %c0_45, %c0_46] : memref<1x4x1xf32, #tpu.memory_space<vmem>>, vector<1x4x1xf32>
      %74 = vector.extract_strided_slice %72 {offsets = [0, 0, 0], sizes = [2, 1, 1], strides = [1, 1, 1]} : vector<2x4x1xf32> to vector<2x1x1xf32>
      %c0_47 = arith.constant 0 : index
      %c0_48 = arith.constant 0 : index
      %c0_49 = arith.constant 0 : index
      %75 = vector.load %arg7[%c0_47, %c0_48, %c0_49] : memref<4x4x1xf32, #tpu.memory_space<vmem>>, vector<1x4x1xf32>
      %76 = vector.broadcast %74 : vector<2x1x1xf32> to vector<2x4x1xf32>
      %77 = vector.broadcast %75 : vector<1x4x1xf32> to vector<2x4x1xf32>
      %78 = arith.mulf %76, %77 : vector<2x4x1xf32>
      %79 = vector.broadcast %73 : vector<1x4x1xf32> to vector<2x4x1xf32>
      %80 = arith.addf %79, %78 : vector<2x4x1xf32>
      %81 = vector.extract_strided_slice %72 {offsets = [0, 1, 0], sizes = [2, 1, 1], strides = [1, 1, 1]} : vector<2x4x1xf32> to vector<2x1x1xf32>
      %c1_50 = arith.constant 1 : index
      %c0_51 = arith.constant 0 : index
      %c0_52 = arith.constant 0 : index
      %82 = vector.load %arg7[%c1_50, %c0_51, %c0_52] : memref<4x4x1xf32, #tpu.memory_space<vmem>>, vector<1x4x1xf32>
      %83 = vector.broadcast %81 : vector<2x1x1xf32> to vector<2x4x1xf32>
      %84 = vector.broadcast %82 : vector<1x4x1xf32> to vector<2x4x1xf32>
      %85 = arith.mulf %83, %84 : vector<2x4x1xf32>
      %86 = arith.addf %80, %85 : vector<2x4x1xf32>
      %87 = vector.extract_strided_slice %72 {offsets = [0, 2, 0], sizes = [2, 1, 1], strides = [1, 1, 1]} : vector<2x4x1xf32> to vector<2x1x1xf32>
      %c2_53 = arith.constant 2 : index
      %c0_54 = arith.constant 0 : index
      %c0_55 = arith.constant 0 : index
      %88 = vector.load %arg7[%c2_53, %c0_54, %c0_55] : memref<4x4x1xf32, #tpu.memory_space<vmem>>, vector<1x4x1xf32>
      %89 = vector.broadcast %87 : vector<2x1x1xf32> to vector<2x4x1xf32>
      %90 = vector.broadcast %88 : vector<1x4x1xf32> to vector<2x4x1xf32>
      %91 = arith.mulf %89, %90 : vector<2x4x1xf32>
      %92 = arith.addf %86, %91 : vector<2x4x1xf32>
      %93 = vector.extract_strided_slice %72 {offsets = [0, 3, 0], sizes = [2, 1, 1], strides = [1, 1, 1]} : vector<2x4x1xf32> to vector<2x1x1xf32>
      %c3_56 = arith.constant 3 : index
      %c0_57 = arith.constant 0 : index
      %c0_58 = arith.constant 0 : index
      %94 = vector.load %arg7[%c3_56, %c0_57, %c0_58] : memref<4x4x1xf32, #tpu.memory_space<vmem>>, vector<1x4x1xf32>
      %95 = vector.broadcast %93 : vector<2x1x1xf32> to vector<2x4x1xf32>
      %96 = vector.broadcast %94 : vector<1x4x1xf32> to vector<2x4x1xf32>
      %97 = arith.mulf %95, %96 : vector<2x4x1xf32>
      %98 = arith.addf %92, %97 : vector<2x4x1xf32>
      %cst_59 = arith.constant 0.000000e+00 : f32
      %99 = vector.broadcast %cst_59 : f32 to vector<2x4x1xf32>
      %100 = arith.maximumf %98, %99 : vector<2x4x1xf32>
      %cst_60 = arith.constant 0.000000e+00 : f32
      %101 = vector.broadcast %cst_60 : f32 to vector<2x4x1xf32>
      %102 = arith.subf %101, %100 : vector<2x4x1xf32>
      %103 = math.exp %102 : vector<2x4x1xf32>
      %cst_61 = arith.constant 1.000000e+00 : f32
      %104 = vector.broadcast %cst_61 : f32 to vector<2x4x1xf32>
      %105 = arith.addf %104, %103 : vector<2x4x1xf32>
      %cst_62 = arith.constant 1.000000e+00 : f32
      %106 = vector.broadcast %cst_62 : f32 to vector<2x4x1xf32>
      %107 = arith.divf %106, %105 : vector<2x4x1xf32>
      %c0_63 = arith.constant 0 : index
      %c0_64 = arith.constant 0 : index
      %c0_65 = arith.constant 0 : index
      %108 = vector.load %arg9[%c0_63, %c0_64, %c0_65] : memref<2x4x1xf32, #tpu.memory_space<vmem>>, vector<2x4x1xf32>
      tpu.vector_store %arg9[%c0_63, %c0_64, %c0_65], %107 {strides = array<i32>} : memref<2x4x1xf32, #tpu.memory_space<vmem>>, vector<2x4x1xf32>,
    } else {
    }
    return
  }
  func.func @transform_0(%arg0: i32, %arg1: i32) -> (i32, i32, i32) {
    %c0_i32 = arith.constant 0 : i32
    %c0_i32_0 = arith.constant 0 : i32
    return %arg0, %c0_i32, %arg1 : i32, i32, i32
  }
  func.func @transform_1(%arg0: i32, %arg1: i32) -> (i32, i32, i32) {
    %c0_i32 = arith.constant 0 : i32
    %c0_i32_0 = arith.constant 0 : i32
    %c0_i32_1 = arith.constant 0 : i32
    %c0_i32_2 = arith.constant 0 : i32
    return %c0_i32, %c0_i32_0, %c0_i32_1 : i32, i32, i32
  }
  func.func @transform_2(%arg0: i32, %arg1: i32) -> (i32, i32, i32) {
    %c0_i32 = arith.constant 0 : i32
    %c0_i32_0 = arith.constant 0 : i32
    %c0_i32_1 = arith.constant 0 : i32
    %c0_i32_2 = arith.constant 0 : i32
    return %c0_i32, %c0_i32_0, %c0_i32_1 : i32, i32, i32
  }
  func.func @transform_3(%arg0: i32, %arg1: i32) -> (i32, i32, i32) {
    %c0_i32 = arith.constant 0 : i32
    %c0_i32_0 = arith.constant 0 : i32
    %c0_i32_1 = arith.constant 0 : i32
    %c0_i32_2 = arith.constant 0 : i32
    return %c0_i32, %c0_i32_0, %c0_i32_1 : i32, i32, i32
  }
  func.func @transform_4(%arg0: i32, %arg1: i32) -> (i32, i32, i32) {
    %c0_i32 = arith.constant 0 : i32
    %c0_i32_0 = arith.constant 0 : i32
    %c0_i32_1 = arith.constant 0 : i32
    %c0_i32_2 = arith.constant 0 : i32
    return %c0_i32, %c0_i32_0, %c0_i32_1 : i32, i32, i32
  }
  func.func @transform_5(%arg0: i32, %arg1: i32) -> (i32, i32, i32) {
    %c0_i32 = arith.constant 0 : i32
    %c0_i32_0 = arith.constant 0 : i32
    %c0_i32_1 = arith.constant 0 : i32
    %c0_i32_2 = arith.constant 0 : i32
    return %c0_i32, %c0_i32_0, %c0_i32_1 : i32, i32, i32
  }
  func.func @transform_6(%arg0: i32, %arg1: i32) -> (i32, i32, i32) {
    %c0_i32 = arith.constant 0 : i32
    %c0_i32_0 = arith.constant 0 : i32
    %c0_i32_1 = arith.constant 0 : i32
    %c0_i32_2 = arith.constant 0 : i32
    return %c0_i32, %c0_i32_0, %c0_i32_1 : i32, i32, i32
  }
  func.func @transform_7(%arg0: i32, %arg1: i32) -> (i32, i32, i32) {
    %c0_i32 = arith.constant 0 : i32
    %c0_i32_0 = arith.constant 0 : i32
    %c0_i32_1 = arith.constant 0 : i32
    return %arg0, %c0_i32, %c0_i32_0 : i32, i32, i32
  }
}

</mosaic_0001>

<bundles_post_ra>
// kernel: tpu_custom_call.1
= control target key start
LH: loop header
LB: loop body
LE: loop exit
PB: predicated region body
PF: predicated region fallthrough
CT: control target
= control target key end

     0   :  { %vm43_vm0 = vcmask 1043456   ;;  %vm30_vm1 = vcmask 3072   ;;  %v282_v2 = vmov 0.0   ;;  %v68_v13 = vlaneseq  ;;  %s434_s0 = inlined_call_operand.vmem [shape: f32[2,4,256], index: 0, kind: input, shape index: {}]   ;;  %s435_s1 = inlined_call_operand.vmem [shape: f32[4,4,1], index: 1, kind: input, shape index: {}]   ;;  %s436_s2 = inlined_call_operand.vmem [shape: f32[1,4,1], index: 2, kind: input, shape index: {}]   ;;  %s437_s3 = inlined_call_operand.vmem [shape: f32[4,4,1], index: 3, kind: input, shape index: {}]   ;;  %s438_s4 = inlined_call_operand.vmem [shape: f32[1,4,1], index: 4, kind: input, shape index: {}]   ;;  %s439_s5 = inlined_call_operand.vmem [shape: f32[4,4,1], index: 5, kind: input, shape index: {}]   ;;  %s440_s6 = inlined_call_operand.vmem [shape: f32[1,4,1], index: 6, kind: input, shape index: {}]   ;;  %s441_s7 = inlined_call_operand.vmem [shape: f32[2,4,1], index: 7, kind: output, shape index: {}]  }
   0x1   :  { %v35_v0 = vld [vmem:[%s434_s0] sm:$0xff]  ;;  %v36_v1 = vld [vmem:[%s434_s0 + $0x8] sm:$0xff]  ;;  %31 = vst.msk [vmem:[#allocation2] sm:$0xf] %vm30_vm1, %v282_v2  ;;  %32 = vst.msk [vmem:[#allocation2 + $0x4] sm:$0xf] %vm30_vm1, %v282_v2 }
   0x2   :  { %v39_v3 = vcombine.high %v35_v0, %v35_v0  ;;  %v44_v4 = vsel %vm43_vm0, %v35_v0, 0.0  ;;  %v40_v5 = vcombine.high %v36_v1, %v36_v1  ;;  %v49_v7 = vsel %vm43_vm0, %v36_v1, 0.0  ;;  %v67_v24 = vld [vmem:[%s435_s1] sm:$0xf]  ;;  %v262_v29 = vld [vmem:[%s435_s1 + $0x4] sm:$0xf] }
   0x3   :  { %v69_v17 = vshrl.u32 %v68_v13, 7  ;;  %v66_v28 = vld [vmem:[%s436_s2] sm:$0xf]  ;;  %v263_v33 = vld [vmem:[%s435_s1 + $0x8] sm:$0xf] }
   0x4   :  { %v45_v6 = vsel %vm43_vm0, %v39_v3, 0.0  ;;  %v50_v8 = vsel %vm43_vm0, %v40_v5, 0.0  ;;  %v264_v38 = vld [vmem:[%s435_s1 + $0xc] sm:$0xf]  ;;  %v127_v57 = vld [vmem:[%s437_s3] sm:$0xf] }
   0x5   :  { %v46_v9 = vadd.f32 %v45_v6, %v44_v4  ;;  %v51_v10 = vadd.f32 %v50_v8, %v49_v7  ;;  %v333_v19 = vsub.s32 0, %v69_v17  ;;  %v335_v20 = vsub.s32 1, %v69_v17  ;;  %v126_v61 = vld [vmem:[%s438_s4] sm:$0xf]  ;;  %v265_v62 = vld [vmem:[%s437_s3 + $0x4] sm:$0xf] }
   0x6   :  { %v337_v22 = vsub.s32 2, %v69_v17  ;;  %v344_v25 = vsub.s32 3, %v69_v17  ;;  %v266_v2 = vld [vmem:[%s437_s3 + $0x8] sm:$0xf]  ;;  %v267_v7 = vld [vmem:[%s437_s3 + $0xc] sm:$0xf] }
   0x7   :  { %47 = vadd.xlane.f32.xlu0 %v46_v9 }
   0x8   :  { %v33_v11 = vld [vmem:[#allocation2] sm:$0xf]  ;;  %v34_v15 = vld [vmem:[#allocation2 + $0x4] sm:$0xf] }
   0xb   :  { %52 = vadd.xlane.f32.xlu0 %v51_v10 }
  0x94   :  { %v48_v12 = vpop.xlane.xlu0 %47 }
  0x95   :  { %v54_v14 = vadd.f32 %v48_v12, %v33_v11 }
  0x97   :  { %57 = vst.msk [vmem:[#allocation2] sm:$0xf] %vm30_vm1, %v54_v14 }
  0x98   :  { %v53_v16 = vpop.xlane.xlu0 %52 }
  0x99   :  { %v55_v18 = vadd.f32 %v53_v16, %v34_v15 }
  0x9b   :  { %58 = vst.msk [vmem:[#allocation2 + $0x4] sm:$0xf] %vm30_vm1, %v55_v18 }
  0x9e   :  { %v62_v21 = vld [vmem:[#allocation2] sm:$0xf] }
  0x9f   :  { %v339_v23 = vmul.f32 0.00390625, %v62_v21 }
  0xa1   :  { %v71_v26 = vrot.slane %v339_v23, %v333_v19  ;;  %v85_v27 = vrot.slane %v339_v23, %v335_v20  ;;  %v99_v32 = vrot.slane %v339_v23, %v337_v22  ;;  %v113_v37 = vrot.slane %v339_v23, %v344_v25 }
  0xa2   :  { %v63_v30 = vld [vmem:[#allocation2 + $0x4] sm:$0xf] }
  0xa3   :  { %v76_v31 = vmul.f32 %v71_v26, %v67_v24  ;;  %v361_v34 = vmul.f32 0.00390625, %v63_v30  ;;  %v90_v36 = vmul.f32 %v262_v29, %v85_v27  ;;  %v104_v42 = vmul.f32 %v263_v33, %v99_v32 }
  0xa4   :  { %v118_v46 = vmul.f32 %v264_v38, %v113_v37  ;;  %v268_v37 = vld [vmem:[%s439_s5 + $0x4] sm:$0xf] }
  0xa5   :  { %v78_v35 = vadd.f32 %v76_v31, %v66_v28  ;;  %v75_v39 = vrot.slane %v361_v34, %v333_v19  ;;  %v89_v40 = vrot.slane %v361_v34, %v335_v20  ;;  %v103_v44 = vrot.slane %v361_v34, %v337_v22  ;;  %v187_v31 = vld [vmem:[%s439_s5] sm:$0xf] }
  0xa6   :  { %v117_v49 = vrot.slane %v361_v34, %v344_v25 }
  0xa7   :  { %v92_v41 = vadd.f32 %v90_v36, %v78_v35  ;;  %v77_v43 = vmul.f32 %v75_v39, %v67_v24  ;;  %v91_v48 = vmul.f32 %v262_v29, %v89_v40  ;;  %v105_v52 = vmul.f32 %v263_v33, %v103_v44  ;;  %v186_v36 = vld [vmem:[%s440_s6] sm:$0xf]  ;;  %v269_v40 = vld [vmem:[%s439_s5 + $0x8] sm:$0xf] }
  0xa8   :  { %v119_v55 = vmul.f32 %v264_v38, %v117_v49 }
  0xa9   :  { %v106_v45 = vadd.f32 %v104_v42, %v92_v41  ;;  %v79_v47 = vadd.f32 %v77_v43, %v66_v28 }
  0xab   :  { %v120_v50 = vadd.f32 %v118_v46, %v106_v45  ;;  %v93_v51 = vadd.f32 %v91_v48, %v79_v47  ;;  %v270_v45 = vld [vmem:[%s439_s5 + $0xc] sm:$0xf] }
  0xad   :  { %v122_v53 = vmax.f32 %v120_v50, 0.0  ;;  %v107_v54 = vadd.f32 %v105_v52, %v93_v51 }
  0xaf   :  { %v124_v56 = vadd.f32 %v122_v53, %v339_v23  ;;  %v121_v58 = vadd.f32 %v119_v55, %v107_v54 }
  0xb1   :  { %v131_v59 = vrot.slane %v124_v56, %v333_v19  ;;  %v145_v60 = vrot.slane %v124_v56, %v335_v20  ;;  %v123_v63 = vmax.f32 %v121_v58, 0.0  ;;  %v159_v1 = vrot.slane %v124_v56, %v337_v22 }
  0xb2   :  { %v173_v6 = vrot.slane %v124_v56, %v344_v25 }
  0xb3   :  { %v136_v0 = vmul.f32 %v131_v59, %v127_v57  ;;  %v125_v3 = vadd.f32 %v123_v63, %v361_v34  ;;  %v150_v5 = vmul.f32 %v265_v62, %v145_v60  ;;  %v164_v11 = vmul.f32 %v266_v2, %v159_v1 }
  0xb4   :  { %v178_v15 = vmul.f32 %v267_v7, %v173_v6 }
  0xb5   :  { %v138_v4 = vadd.f32 %v136_v0, %v126_v61  ;;  %v135_v8 = vrot.slane %v125_v3, %v333_v19  ;;  %v149_v9 = vrot.slane %v125_v3, %v335_v20  ;;  %v163_v13 = vrot.slane %v125_v3, %v337_v22 }
  0xb6   :  { %v177_v18 = vrot.slane %v125_v3, %v344_v25 }
  0xb7   :  { %v152_v10 = vadd.f32 %v150_v5, %v138_v4  ;;  %v137_v12 = vmul.f32 %v135_v8, %v127_v57  ;;  %v151_v17 = vmul.f32 %v265_v62, %v149_v9  ;;  %v165_v26 = vmul.f32 %v266_v2, %v163_v13 }
  0xb8   :  { %v179_v29 = vmul.f32 %v267_v7, %v177_v18 }
  0xb9   :  { %v166_v14 = vadd.f32 %v164_v11, %v152_v10  ;;  %v139_v16 = vadd.f32 %v137_v12, %v126_v61 }
  0xbb   :  { %v180_v21 = vadd.f32 %v178_v15, %v166_v14  ;;  %v153_v24 = vadd.f32 %v151_v17, %v139_v16 }
  0xbd   :  { %v182_v27 = vmax.f32 %v180_v21, 0.0  ;;  %v167_v28 = vadd.f32 %v165_v26, %v153_v24 }
  0xbf   :  { %v184_v30 = vadd.f32 %v182_v27, %v339_v23  ;;  %v181_v32 = vadd.f32 %v179_v29, %v167_v28 }
  0xc1   :  { %v191_v33 = vrot.slane %v184_v30, %v333_v19  ;;  %v205_v35 = vrot.slane %v184_v30, %v335_v20  ;;  %v183_v38 = vmax.f32 %v181_v32, 0.0  ;;  %v219_v23 = vrot.slane %v184_v30, %v337_v22 }
  0xc2   :  { %v233_v44 = vrot.slane %v184_v30, %v344_v25 }
  0xc3   :  { %v196_v39 = vmul.f32 %v191_v33, %v187_v31  ;;  %v185_v41 = vadd.f32 %v183_v38, %v361_v34  ;;  %v210_v43 = vmul.f32 %v268_v37, %v205_v35  ;;  %v224_v49 = vmul.f32 %v269_v40, %v219_v23 }
  0xc4   :  { %v238_v53 = vmul.f32 %v270_v45, %v233_v44 }
  0xc5   :  { %v198_v42 = vadd.f32 %v196_v39, %v186_v36  ;;  %v195_v46 = vrot.slane %v185_v41, %v333_v19  ;;  %v209_v47 = vrot.slane %v185_v41, %v335_v20  ;;  %v223_v51 = vrot.slane %v185_v41, %v337_v22 }
  0xc6   :  { %v237_v55 = vrot.slane %v185_v41, %v344_v25 }
  0xc7   :  { %v212_v48 = vadd.f32 %v210_v43, %v198_v42  ;;  %v197_v50 = vmul.f32 %v195_v46, %v187_v31  ;;  %v211_v54 = vmul.f32 %v268_v37, %v209_v47  ;;  %v225_v58 = vmul.f32 %v269_v40, %v223_v51 }
  0xc8   :  { %v239_v61 = vmul.f32 %v270_v45, %v237_v55 }
  0xc9   :  { %v226_v52 = vadd.f32 %v224_v49, %v212_v48  ;;  %v199_v34 = vadd.f32 %v197_v50, %v186_v36 }
  0xcb   :  { %v240_v56 = vadd.f32 %v238_v53, %v226_v52  ;;  %v213_v57 = vadd.f32 %v211_v54, %v199_v34 }
  0xcd   :  { %v242_v59 = vmax.f32 %v240_v56, 0.0  ;;  %v227_v60 = vadd.f32 %v225_v58, %v213_v57 }
  0xcf   :  { %v244_v19 = vsub.f32 0.0, %v242_v59  ;;  %v241_v62 = vadd.f32 %v239_v61, %v227_v60 }
  0xd1   :  { %v246_v20 = vmul.f32 1.442695, %v244_v19  ;;  %v243_v63 = vmax.f32 %v241_v62, 0.0 }
  0xd3   :  { %274 = vpow2.f32 %v246_v20  ;;  %v245_v0 = vsub.f32 0.0, %v243_v63 }
  0xd5   :  { %v248_v1 = vmul.f32 1.442695, %v245_v0 }
  0xd7   :  { %276 = vpow2.f32 %v248_v1 }
  0xdd   :  { %v275_v22 = vpop.eup %274 }
  0xde   :  { %v250_v2 = vadd.f32 1.0, %v275_v22 }
  0xe0   :  { %278 = vrcp.f32 %v250_v2 }
  0xe1   :  { %v277_v3 = vpop.eup %276 }
  0xe2   :  { %v251_v4 = vadd.f32 1.0, %v277_v3 }
  0xe4   :  { %280 = vrcp.f32 %v251_v4 }
  0xea   :  { %v279_v25 = vpop.eup %278 }
  0xeb   :  { %256 = vst.msk [vmem:[%s441_s7] sm:$0xf] %vm30_vm1, %v279_v25 }
  0xee   :  { %v281_v5 = vpop.eup %280 }
  0xef   :  { %257 = vst.msk [vmem:[%s441_s7 + $0x4] sm:$0xf] %vm30_vm1, %v281_v5 }

</bundles_post_ra>
